<compile_context>
chip_gen: v7x
topology: tpu7x:2x2x1
jax: 0.10.0
libtpu: 0.0.40
codegen_flags: <defaults>
</compile_context>

<pallas_src>
import functools

import jax
import jax.numpy as jnp
from jax.experimental import pallas as pl
from jax.experimental.pallas import tpu as pltpu


def _round_up(x, m):
    return (x + m - 1) // m * m


def _encoder_kernel(x_ref, w_ref, b_ref, o_ref, *, compute_dtype=None):
    # One fused pass per batch tile: MXU matmul (f32 accumulate) + bias + ReLU.
    x = x_ref[...]
    w = w_ref[...]
    if compute_dtype is not None:
        # In-VMEM cast only (no extra HBM traffic in the wrapper).
        x = x.astype(compute_dtype)
        w = w.astype(compute_dtype)
    y = jnp.dot(x, w, preferred_element_type=jnp.float32)
    y = y + b_ref[...]                                    # (1, N) broadcast over rows
    o_ref[...] = jnp.maximum(y, 0.0).astype(o_ref.dtype)  # ReLU fused into the store


def _xla_forward(x, w_t, b, out_dtype):
    y = jnp.dot(x, w_t, preferred_element_type=jnp.float32) + b.astype(jnp.float32)[None, :]
    return jnp.maximum(y, 0.0).astype(out_dtype)


def _vmem_capacity_bytes():
    """Per-core VMEM capacity; conservative 64 MiB (v7x per-TC) if unknown."""
    try:
        cap = getattr(pltpu.get_tpu_info(), "vmem_capacity_bytes", None)
        if cap:
            return int(cap)
    except Exception:
        pass
    return 64 * 1024 * 1024


def _choose_block_m(batch, in_dim, enc_dim, x_bytes, w_bytes, out_bytes, budget, mult):
    """Largest multiple-of-`mult` batch tile whose double-buffered x/y tiles plus the
    resident W (conservatively counted twice for its pipeline copy) fit the budget.
    Returns None if W alone doesn't fit -> caller falls back to XLA."""
    w_resident = 2 * in_dim * enc_dim * w_bytes + 2 * enc_dim * 4
    per_row = 2 * (in_dim * x_bytes + enc_dim * out_bytes)   # double-buffered x + y row
    avail = budget - w_resident
    if avail < mult * per_row:
        return None
    tm = (avail // per_row) // mult * mult
    tm = int(max(mult, min(tm, 1024)))                       # 1024 rows amortizes per-step cost
    # At least 2 grid tiles so both v7x TensorCores get work under "parallel".
    tm = min(tm, _round_up(pl.cdiv(batch, 2), mult))
    tm = min(tm, _round_up(batch, mult))                     # never larger than the problem
    return max(tm, mult)


@functools.partial(
    jax.jit, static_argnames=("block_m", "compute_dtype", "min_pallas_batch")
)
def encoder_forward(x, w_t, b, *, block_m=None, compute_dtype=None, min_pallas_batch=256):
    """x: (B, input_dim); w_t: (input_dim, encoding_dim); b: (encoding_dim,)."""
    batch, in_dim = x.shape
    assert w_t.shape[0] == in_dim
    enc_dim = w_t.shape[1]
    out_dtype = x.dtype

    # Tiny problems: pallas_call fixed overhead dominates -> let XLA fuse it.
    if batch < min_pallas_batch:
        return _xla_forward(x, w_t, b, out_dtype)

    x_bytes = jnp.dtype(x.dtype).itemsize
    w_bytes = jnp.dtype(w_t.dtype).itemsize
    out_bytes = jnp.dtype(out_dtype).itemsize
    # Sublane packing of the stored x dtype: bf16 packs 2 rows/sublane, int8 packs 4.
    mult = {4: 8, 2: 16, 1: 32}.get(x_bytes, 8)

    cap = _vmem_capacity_bytes()
    budget = max(24 << 20, int(cap * 0.65))          # ~83 MiB on v5e/v6e, ~41 MiB on v7x
    per_row = 2 * (in_dim * x_bytes + enc_dim * out_bytes)
    w_resident = 2 * in_dim * enc_dim * w_bytes + 2 * enc_dim * 4

    if block_m is not None:
        tm = _round_up(min(block_m, _round_up(batch, mult)), mult)
        if w_resident + tm * per_row > budget:
            return _xla_forward(x, w_t, b, out_dtype)
    else:
        tm = _choose_block_m(batch, in_dim, enc_dim, x_bytes, w_bytes, out_bytes,
                             budget, mult)
        if tm is None:
            # Resident-W strategy doesn't fit VMEM (hits v7x first); see TODO above.
            return _xla_forward(x, w_t, b, out_dtype)

    # Keep the compiler's scoped-VMEM limit in sync with the sizing math.
    need = w_resident + tm * per_row + (4 << 20)
    vmem_limit = int(min(int(cap * 0.9), max(need, 32 << 20)))

    bias2d = b.astype(jnp.float32).reshape(1, enc_dim)
    kernel = functools.partial(_encoder_kernel, compute_dtype=compute_dtype)

    return pl.pallas_call(
        kernel,
        out_shape=jax.ShapeDtypeStruct((batch, enc_dim), out_dtype),
        grid=(pl.cdiv(batch, tm),),                       # partial last tile is masked
        in_specs=[
            # x: streamed per batch tile; full K dim (no wrapper-side K padding).
            pl.BlockSpec((tm, in_dim), lambda i: (i, 0)),
            # W: full-dim block, constant index_map -> resident in VMEM across grid.
            pl.BlockSpec((in_dim, enc_dim), lambda i: (0, 0)),
            # bias: resident.
            pl.BlockSpec((1, enc_dim), lambda i: (0, 0)),
        ],
        # Output written directly at (batch, enc_dim) -- no padding, no slice pass.
        out_specs=pl.BlockSpec((tm, enc_dim), lambda i: (i, 0)),
        compiler_params=pltpu.CompilerParams(
            # Independent batch tiles -> megacore-shardable on v7x; no-op on v5e/v6e.
            dimension_semantics=("parallel",),
            vmem_limit_bytes=vmem_limit,
        ),
    )(x, w_t, bias2d)


def init_params(key, input_dim, encoding_dim, dtype=jnp.float32):
    """Deterministic init mimicking nn.Linear's uniform(-1/sqrt(fan_in), 1/sqrt(fan_in)).
    Weight is created once in its final dtype/layout (no per-call pad/cast)."""
    k_w, k_b = jax.random.split(key)
    bound = 1.0 / jnp.sqrt(jnp.float32(input_dim))
    # PyTorch weight is (encoding_dim, input_dim); we store its transpose.
    w = jax.random.uniform(k_w, (encoding_dim, input_dim), jnp.float32, -bound, bound)
    b = jax.random.uniform(k_b, (encoding_dim,), jnp.float32, -bound, bound)
    return w.T.astype(dtype), b.astype(jnp.float32)


if __name__ == "__main__":
    key = jax.random.PRNGKey(0)
    k_x, k_p, k_x2, k_x3 = jax.random.split(key, 4)

    # Small shapes consistent with the Encoder module.
    batch, input_dim, encoding_dim = 8, 32, 16
    x = jax.random.normal(k_x, (batch, input_dim), jnp.float32)
    w_t, bias = init_params(k_p, input_dim, encoding_dim)

    # 1) f32 Pallas path, single batch tile (force Pallas past the tiny-batch fallback).
    out = jax.block_until_ready(encoder_forward(x, w_t, bias, min_pallas_batch=0))
    ref = jnp.maximum(x @ w_t + bias[None, :], 0.0)
    assert out.shape == (batch, encoding_dim)
    assert jnp.allclose(out, ref, atol=1e-5, rtol=1e-5)

    # 2) Multi-tile path: 4 batch tiles (block_m=16) exercising the parallel grid.
    batch2 = 64
    x2 = jax.random.normal(k_x2, (batch2, input_dim), jnp.float32)
    out2 = jax.block_until_ready(
        encoder_forward(x2, w_t, bias, block_m=16, min_pallas_batch=0))
    ref2 = jnp.maximum(x2 @ w_t + bias[None, :], 0.0)
    assert out2.shape == (batch2, encoding_dim)
    assert jnp.allclose(out2, ref2, atol=1e-5, rtol=1e-5)

    # 3) Ragged batch: cdiv grid with a masked partial last tile (no padding/slicing).
    batch3 = 50
    x3 = jax.random.normal(k_x3, (batch3, input_dim), jnp.float32)
    out3 = jax.block_until_ready(
        encoder_forward(x3, w_t, bias, block_m=16, min_pallas_batch=0))
    ref3 = jnp.maximum(x3 @ w_t + bias[None, :], 0.0)
    assert out3.shape == (batch3, encoding_dim)
    assert jnp.allclose(out3, ref3, atol=1e-5, rtol=1e-5)

    # 4) bf16 fast path: x and W stored in bf16 upstream, f32 accumulate in-kernel.
    w_bf, bias_bf = init_params(k_p, input_dim, encoding_dim, dtype=jnp.bfloat16)
    x2_bf = x2.astype(jnp.bfloat16)
    out4 = jax.block_until_ready(
        encoder_forward(x2_bf, w_bf, bias_bf, block_m=16, min_pallas_batch=0))
    assert out4.dtype == jnp.bfloat16
    assert jnp.allclose(out4.astype(jnp.float32), ref2, atol=5e-2, rtol=5e-2)

    # 5) compute_dtype: f32-stored inputs cast to bf16 inside the kernel (no wrapper cast).
    out5 = jax.block_until_ready(
        encoder_forward(x2, w_t, bias, block_m=16, min_pallas_batch=0,
                        compute_dtype=jnp.bfloat16))
    assert jnp.allclose(out5, ref2, atol=5e-2, rtol=5e-2)

    # 6) Default tiny-batch behaviour: falls back to XLA fusion, same numerics.
    out6 = jax.block_until_ready(encoder_forward(x, w_t, bias))
    assert jnp.allclose(out6, ref, atol=1e-5, rtol=1e-5)

    print("KERNEL_OK")
</pallas_src>

<mosaic_0001>
module attributes {stable_mosaic.version = 11 : i64} {
  func.func @_encoder_kernel(%arg0: i32, %arg1: memref<8x32xf32, #tpu.memory_space<vmem>>, %arg2: memref<32x16xf32, #tpu.memory_space<vmem>>, %arg3: memref<1x16xf32, #tpu.memory_space<vmem>>, %arg4: memref<8x16xf32, #tpu.memory_space<vmem>>) attributes {dimension_semantics = [#tpu.dimension_semantics<parallel>], iteration_bounds = array<i64: 1>, scalar_prefetch = 0 : i64, scratch_operands = 0 : i64, tpu.core_type = #tpu.core_type<tc>, window_params = [{transform_indices = @transform_0, window_bounds = array<i64: 8, 32>}, {pipeline_mode = #tpu.pipeline_mode<synchronous>, transform_indices = @transform_1, window_bounds = array<i64: 32, 16>}, {pipeline_mode = #tpu.pipeline_mode<synchronous>, transform_indices = @transform_2, window_bounds = array<i64: 1, 16>}, {transform_indices = @transform_3, window_bounds = array<i64: 8, 16>}]} {
    %c0 = arith.constant 0 : index
    %c0_0 = arith.constant 0 : index
    %0 = vector.load %arg1[%c0, %c0_0] : memref<8x32xf32, #tpu.memory_space<vmem>>, vector<8x32xf32>
    %c0_1 = arith.constant 0 : index
    %c0_2 = arith.constant 0 : index
    %1 = vector.load %arg2[%c0_1, %c0_2] : memref<32x16xf32, #tpu.memory_space<vmem>>, vector<32x16xf32>
    %cst = arith.constant dense<0.000000e+00> : vector<8x16xf32>
    %2 = tpu.matmul %0, %1, %cst {dimension_numbers = #tpu.dot_dimension_numbers<[1], [0], [0], [1], [0, 0, 1, 1], [], []>} : vector<8x32xf32>, vector<32x16xf32>, vector<8x16xf32> -> vector<8x16xf32>
    %c0_3 = arith.constant 0 : index
    %c0_4 = arith.constant 0 : index
    %3 = vector.load %arg3[%c0_3, %c0_4] : memref<1x16xf32, #tpu.memory_space<vmem>>, vector<1x16xf32>
    %4 = vector.broadcast %3 : vector<1x16xf32> to vector<8x16xf32>
    %5 = arith.addf %2, %4 : vector<8x16xf32>
    %cst_5 = arith.constant 0.000000e+00 : f32
    %6 = vector.broadcast %cst_5 : f32 to vector<8x16xf32>
    %7 = arith.maximumf %5, %6 : vector<8x16xf32>
    %c0_6 = arith.constant 0 : index
    %c0_7 = arith.constant 0 : index
    %8 = vector.load %arg4[%c0_6, %c0_7] : memref<8x16xf32, #tpu.memory_space<vmem>>, vector<8x16xf32>
    tpu.vector_store %arg4[%c0_6, %c0_7], %7 {strides = array<i32>} : memref<8x16xf32, #tpu.memory_space<vmem>>, vector<8x16xf32>,
    return
  }
  func.func @transform_0(%arg0: i32) -> (i32, i32) {
    %c0_i32 = arith.constant 0 : i32
    %c0_i32_0 = arith.constant 0 : i32
    return %arg0, %c0_i32 : i32, i32
  }
  func.func @transform_1(%arg0: i32) -> (i32, i32) {
    %c0_i32 = arith.constant 0 : i32
    %c0_i32_0 = arith.constant 0 : i32
    %c0_i32_1 = arith.constant 0 : i32
    return %c0_i32, %c0_i32_0 : i32, i32
  }
  func.func @transform_2(%arg0: i32) -> (i32, i32) {
    %c0_i32 = arith.constant 0 : i32
    %c0_i32_0 = arith.constant 0 : i32
    %c0_i32_1 = arith.constant 0 : i32
    return %c0_i32, %c0_i32_0 : i32, i32
  }
  func.func @transform_3(%arg0: i32) -> (i32, i32) {
    %c0_i32 = arith.constant 0 : i32
    %c0_i32_0 = arith.constant 0 : i32
    return %arg0, %c0_i32 : i32, i32
  }
}

</mosaic_0001>

<bundles_post_ra>
// kernel: encoder_forward.1
= control target key start
LH: loop header
LB: loop body
LE: loop exit
PB: predicated region body
PF: predicated region fallthrough
CT: control target
= control target key end

     0   :  { %v170_v3 = vmov 0.0|0.0   ;;  %vm171_vm0 = vmmov 0   ;;  %v172_v6 = vmov 0.0   ;;  %s224_s0 = inlined_call_operand.vmem [shape: f32[8,32], index: 0, kind: input, shape index: {}]   ;;  %s225_s1 = inlined_call_operand.vmem [shape: f32[32,16], index: 1, kind: input, shape index: {}]   ;;  %s226_s2 = inlined_call_operand.vmem [shape: f32[1,16], index: 2, kind: input, shape index: {}]   ;;  %s227_s3 = inlined_call_operand.hbm [shape: f32[8,16], index: 3, kind: output, shape index: {}]  }
   0x1   :  { %v16_v0 = vld [vmem:[%s225_s1] sm:$0xff]  ;;  %v17_v1 = vld [vmem:[%s225_s1 + $0x8] sm:$0xff]  ;;  %v18_v2 = vld [vmem:[%s225_s1 + $0x10] sm:$0xff]  ;;  %136 = vmatprep.subr.bf16.mxu0 %v170_v3  ;;  %133 = vmatprep.mubr.msk.f32.mxu0 %vm171_vm0, %v172_v6 }
   0x2   :  { %v137_v4 = vpack.c.bf16 %v17_v1, %v16_v0  ;;  %v19_v5 = vld [vmem:[%s225_s1 + $0x18] sm:$0xff] }
   0x3   :  { %8 = vsyncpa [#allocation3], 0  ;;  %v140_v7 = vpack.c.bf16 %v19_v5, %v18_v2  ;;  %v15_v8 = vld [vmem:[%s224_s0] sm:$0xff]  ;;  %vm27_vm1 = vcmask 261120   ;;  %s173_s1 = smov [#allocation2]   ;;  %vm102_vm2 = vcmask 130048  }
   0x4   :  { %138 = vmatpush3.bf16.msra.mxu0 %v137_v4  ;;  %v118_v9 = vld [vmem:[%s226_s2] ss:$0 sm:$0xff]  ;;  %s110_s24 = sshll.u32 %s173_s1, 4  ;;  %s111_s24 = int_to_ptr.vmem [resolvable:$true] %s110_s24 }
   0x5   :  { %139 = vmatprep.subr.bf16.mxu0 %v170_v3  ;;  %s146_s25 = scalar_lea.vmem %s111_s24, 128  ;;  %p151_p1 = scmp.lt.s32.totalorder %s111_s24, %s111_s24 }
   0x6   :  { %p147_p0 = scmp.ne.s32.totalorder %s111_s24, %s146_s25  ;;  %p152_p2 = scmp.lt.s32.totalorder %s146_s25, %s146_s25 }
   0x8   :  { %141 = vmatpush3.bf16.msra.mxu0 %v140_v7  ;;  %p153_p3 = por %p152_p2, %p151_p1 }
   0xa   :  { %p154_p4 = pnand %p153_p3, %p147_p0 }
   0xb   :  { %134 = vmatmul.mubr.msk.f32.vlgmr.msra.gmra.mrb[0].mxu0 %vm27_vm1, %v15_v8 }
  0xde   :  { %v97_v10 = vpop.f32.mrb[0].mxu0 }
  0xdf   :  { %v98_v11 = vadd.f32 %v118_v9, %v97_v10  ;;  %v135_v12 = vpop.f32.mrb[1].mxu0 }
  0xe1   :  { %v101_v13 = vmax.f32 %v98_v11, 0.0 }
  0xe3   :  { %103 = vst.msk [vmem:[#allocation2] sm:$0xff] %vm102_vm2, %v101_v13 }
  0xe4   :  { %157 = shalt.err (!%p154_p4)
}
  0xe5   :  { %s158_s2 = scalar_lea.hbm %s227_s3, 128 }
  0xe6   :  { %p159_p5 = scmp.ne.s32.totalorder %s227_s3, %s158_s2  ;;  %p162_p6 = scmp.lt.u32.totalorder %s158_s2, %s227_s3 }
  0xe8   :  { %p164_p7 = pnand %p162_p6, %p159_p5 }
  0xea   :  { %167 = shalt.err (!%p164_p7)
}
  0xeb   :  { %113 = dma.vmem_to_hbm [thread:$0]  %s111_s24, 128, %s227_s3, [#allocation3]  }
  0xec   :  { %168 = dma.done.wait [#allocation3], 128  }
  0xed   :  { %169 = vsyncadd [#allocation3], 4294967168 }
  0xee   :  { %117 = vsyncpa [#allocation3], 1 }

</bundles_post_ra>
